<compile_context>
chip_gen: v6e
topology: v6e:2x2x1
jax: 0.10.0
libtpu: 0.0.40
codegen_flags: <defaults>
</compile_context>

<pallas_src>
import functools
import math

import jax
import jax.numpy as jnp
from jax import lax
from jax.experimental import pallas as pl
from jax.experimental.pallas import tpu as pltpu


# ---------------------------------------------------------------------------
# Tiled Linear (nn.Linear, bias=False):  y = x @ W.T,  W has torch layout (N, K)
# ---------------------------------------------------------------------------
def _linear_nt_kernel(x_ref, w_ref, o_ref, acc_ref):
    # x: (tm, tk), w: (tn, tk)  ->  acc/o: (tm, tn); reduction over grid axis 2.
    @pl.when(pl.program_id(2) == 0)
    def _():
        acc_ref[...] = jnp.zeros_like(acc_ref)

    acc_ref[...] += lax.dot_general(
        x_ref[...], w_ref[...],
        dimension_numbers=(((1,), (1,)), ((), ())),   # x @ w.T, no transpose copy
        preferred_element_type=jnp.float32,
    )

    @pl.when(pl.program_id(2) == pl.num_programs(2) - 1)
    def _():
        o_ref[...] = acc_ref[...].astype(o_ref.dtype)


def _pick_tile(dim, cap, align):
    """Largest tile <= cap that divides dim and is `align`-aligned; else full dim."""
    if dim <= cap:
        return dim
    t = (cap // align) * align
    while t >= align:
        if dim % t == 0:
            return t
        t -= align
    return dim


def pallas_linear_nt(x, w, *, tm_cap=256, tn_cap=256, tk_cap=512):
    """x: (M, K) float32, w: (N, K) float32 (torch Linear weight layout)."""
    M, K = x.shape
    N, K2 = w.shape
    assert K == K2
    tm = _pick_tile(M, tm_cap, 8)     # second-minor: 8-aligned
    tn = _pick_tile(N, tn_cap, 128)   # output lanes: 128-aligned
    tk = _pick_tile(K, tk_cap, 128)   # contraction lanes: 128-aligned
    grid = (M // tm, N // tn, K // tk)
    return pl.pallas_call(
        _linear_nt_kernel,
        out_shape=jax.ShapeDtypeStruct((M, N), x.dtype),
        grid_spec=pltpu.PrefetchScalarGridSpec(
            num_scalar_prefetch=0,
            grid=grid,
            in_specs=[
                pl.BlockSpec((tm, tk), lambda i, j, kk: (i, kk)),
                pl.BlockSpec((tn, tk), lambda i, j, kk: (j, kk)),
            ],
            out_specs=pl.BlockSpec((tm, tn), lambda i, j, kk: (i, j)),
            scratch_shapes=[pltpu.VMEM((tm, tn), jnp.float32)],
        ),
        compiler_params=pltpu.CompilerParams(
            dimension_semantics=("parallel", "parallel", "arbitrary")
        ),
    )(x, w)


# ---------------------------------------------------------------------------
# SelfAttention: one batch element per grid step, all heads inside the step
# ---------------------------------------------------------------------------
def _attention_kernel(mask_ref, qkg_ref, o_ref, *, heads, d_k):
    # mask_ref: (1, 1, seq) int32 (1 => masked key position)
    # qkg_ref : (1, seq, 3*heads*d_k)  fused [Q | K | G] projection layout
    # o_ref   : (1, seq, heads*d_k)    concat-of-heads output (lane dense)
    F = heads * d_k
    qkg = qkg_ref[0]                                   # (seq, 3F)
    seq = qkg.shape[0]
    scale = jnp.float32(1.0 / math.sqrt(d_k))

    # Hoist the mask broadcast out of the head loop (broadcast_in_dim is not CSE'd).
    mask2d = jnp.broadcast_to(mask_ref[0], (seq, seq)) != 0   # (seq, seq) bool

    outs = []
    for h in range(heads):                             # static unroll over heads
        q = qkg[:, h * d_k:(h + 1) * d_k] * scale      # scale the small operand
        k = qkg[:, F + h * d_k:F + (h + 1) * d_k]
        g = qkg[:, 2 * F + h * d_k:2 * F + (h + 1) * d_k]

        # QK^T via contraction of last axes -- no explicit K transpose materialized.
        s = lax.dot_general(q, k, (((1,), (1,)), ((), ())),
                            preferred_element_type=jnp.float32)   # (seq, seq)
        s = jnp.where(mask2d, jnp.float32(-1000000000.0), s)       # masked_fill

        # numerically-stable softmax over keys (last axis), f32 throughout
        s = s - jnp.max(s, axis=-1, keepdims=True)
        p = jnp.exp(s)
        p = p / jnp.sum(p, axis=-1, keepdims=True)

        outs.append(lax.dot_general(p, g, (((1,), (0,)), ((), ())),
                                    preferred_element_type=jnp.float32))

    # Single lane-dense store of all heads (heads*d_k wide).
    o_ref[0] = jnp.concatenate(outs, axis=-1).astype(o_ref.dtype)
    # TODO(synk): flash-style kv tiling (online softmax) for seq >~ 1024 on v7x
    # (64 MiB VMEM) is not implemented; this kernel materializes (seq, seq) scores.


def pallas_self_attention(qkg, mask_i32, heads, d_k):
    """qkg: (bs, seq, 3*heads*d_k) float32; mask_i32: (bs, 1, seq) int32 (1=masked)."""
    bs, seq, three_f = qkg.shape
    F = heads * d_k
    return pl.pallas_call(
        functools.partial(_attention_kernel, heads=heads, d_k=d_k),
        out_shape=jax.ShapeDtypeStruct((bs, seq, F), qkg.dtype),
        grid=(bs,),
        in_specs=[
            pl.BlockSpec((1, 1, seq), lambda b: (b, 0, 0)),
            pl.BlockSpec((1, seq, three_f), lambda b: (b, 0, 0)),
        ],
        out_specs=pl.BlockSpec((1, seq, F), lambda b: (b, 0, 0)),
        compiler_params=pltpu.CompilerParams(
            dimension_semantics=("parallel",)
        ),
    )(mask_i32, qkg)


# ---------------------------------------------------------------------------
# MultiHeadAttention forward
# ---------------------------------------------------------------------------
def multi_head_attention(features, id_box, k_id, params, heads):
    bs, seq, in_features = features.shape
    d_k = in_features // heads

    x2 = features.reshape(bs * seq, in_features)

    # Fused Q/K/G projection: x read from HBM once, one tiled matmul.
    w_qkg = jnp.concatenate([params["wq"], params["wk"], params["wg"]], axis=0)
    qkg = pallas_linear_nt(x2, w_qkg).reshape(bs, seq, 3 * in_features)

    mask_i32 = (id_box == k_id).astype(jnp.int32)[:, None, :]   # (bs, 1, seq)

    # Attention reads the projection layout directly and writes the concat-of-heads
    # layout directly -> no activation transposes around it.
    attn = pallas_self_attention(qkg, mask_i32, heads, d_k)
    # TODO(synk): dropout is identity in eval mode; training-mode dropout not implemented.

    out = pallas_linear_nt(attn.reshape(bs * seq, in_features), params["wo"])
    return out.reshape(bs, seq, in_features)


# ---------------------------------------------------------------------------
# Pure-JAX reference (for correctness check)
# ---------------------------------------------------------------------------
def reference_forward(features, id_box, k_id, params, heads):
    bs, seq, in_features = features.shape
    d_k = in_features // heads

    def lin(x, w):
        return x @ w.T

    def proj(w):
        return lin(features, w).reshape(bs, seq, heads, d_k).transpose(0, 2, 1, 3)

    q, k, g = proj(params["wq"]), proj(params["wk"]), proj(params["wg"])
    scores = jnp.einsum("bhqd,bhkd->bhqk", q, k) / math.sqrt(d_k)
    mask = (id_box == k_id)[:, None, None, :]
    scores = jnp.where(mask, -1000000000.0, scores)
    p = jax.nn.softmax(scores, axis=-1)
    o = jnp.einsum("bhqk,bhkd->bhqd", p, g)
    concat = o.transpose(0, 2, 1, 3).reshape(bs, seq, in_features)
    return lin(concat, params["wo"])


def xavier_normal(key, out_f, in_f):
    std = math.sqrt(2.0 / (in_f + out_f))
    return std * jax.random.normal(key, (out_f, in_f), dtype=jnp.float32)


if __name__ == "__main__":
    heads = 4
    in_features = 32
    bs, seq = 2, 8
    k_id = 1

    root = jax.random.PRNGKey(0)
    kq, kk, kg, ko, kf, kid = jax.random.split(root, 6)

    params = {
        "wq": xavier_normal(kq, in_features, in_features),
        "wk": xavier_normal(kk, in_features, in_features),
        "wg": xavier_normal(kg, in_features, in_features),
        "wo": xavier_normal(ko, in_features, in_features),
    }

    features = jax.random.normal(kf, (bs, seq, in_features), dtype=jnp.float32)
    id_box = jax.random.randint(kid, (bs, seq), minval=0, maxval=3, dtype=jnp.int32)

    out = multi_head_attention(features, id_box, k_id, params, heads)
    out = jax.block_until_ready(out)

    ref = reference_forward(features, id_box, k_id, params, heads)
    assert out.shape == (bs, seq, in_features)
    assert jnp.allclose(out, ref, atol=1e-4, rtol=1e-4), "mismatch vs reference"

    print("KERNEL_OK")
</pallas_src>

<mosaic_0001>
module attributes {stable_mosaic.version = 11 : i64} {
  func.func @_linear_nt_kernel(%arg0: i32, %arg1: i32, %arg2: i32, %arg3: memref<16x32xf32, #tpu.memory_space<vmem>>, %arg4: memref<96x32xf32, #tpu.memory_space<vmem>>, %arg5: memref<16x96xf32, #tpu.memory_space<vmem>>, %arg6: memref<16x96xf32, #tpu.memory_space<vmem>>) attributes {dimension_semantics = [#tpu.dimension_semantics<parallel>, #tpu.dimension_semantics<parallel>, #tpu.dimension_semantics<arbitrary>], iteration_bounds = array<i64: 1, 1, 1>, scalar_prefetch = 0 : i64, scratch_operands = 1 : i64, tpu.core_type = #tpu.core_type<tc>, window_params = [{transform_indices = @transform_0, window_bounds = array<i64: 16, 32>}, {transform_indices = @transform_1, window_bounds = array<i64: 96, 32>}, {transform_indices = @transform_2, window_bounds = array<i64: 16, 96>}]} {
    %c0_i32 = arith.constant 0 : i32
    %0 = arith.cmpi eq, %arg2, %c0_i32 : i32
    %1 = arith.extui %0 : i1 to i32
    %c0_i32_0 = arith.constant 0 : i32
    %2 = arith.cmpi ne, %1, %c0_i32_0 : i32
    scf.if %2 {
      %cst_10 = arith.constant 0.000000e+00 : f32
      %12 = vector.broadcast %cst_10 : f32 to vector<16x96xf32>
      %c0_11 = arith.constant 0 : index
      %c0_12 = arith.constant 0 : index
      %13 = vector.load %arg6[%c0_11, %c0_12] : memref<16x96xf32, #tpu.memory_space<vmem>>, vector<16x96xf32>
      tpu.vector_store %arg6[%c0_11, %c0_12], %12 {strides = array<i32>} : memref<16x96xf32, #tpu.memory_space<vmem>>, vector<16x96xf32>,
    } else {
    }
    %c0 = arith.constant 0 : index
    %c0_1 = arith.constant 0 : index
    %3 = vector.load %arg6[%c0, %c0_1] : memref<16x96xf32, #tpu.memory_space<vmem>>, vector<16x96xf32>
    %c0_2 = arith.constant 0 : index
    %c0_3 = arith.constant 0 : index
    %4 = vector.load %arg3[%c0_2, %c0_3] : memref<16x32xf32, #tpu.memory_space<vmem>>, vector<16x32xf32>
    %c0_4 = arith.constant 0 : index
    %c0_5 = arith.constant 0 : index
    %5 = vector.load %arg4[%c0_4, %c0_5] : memref<96x32xf32, #tpu.memory_space<vmem>>, vector<96x32xf32>
    %cst = arith.constant dense<0.000000e+00> : vector<16x96xf32>
    %6 = tpu.matmul %4, %5, %cst {dimension_numbers = #tpu.dot_dimension_numbers<[1], [1], [0], [0], [0, 0, 1, 0], [], []>} : vector<16x32xf32>, vector<96x32xf32>, vector<16x96xf32> -> vector<16x96xf32>
    %7 = arith.addf %3, %6 : vector<16x96xf32>
    %c0_6 = arith.constant 0 : index
    %c0_7 = arith.constant 0 : index
    %8 = vector.load %arg6[%c0_6, %c0_7] : memref<16x96xf32, #tpu.memory_space<vmem>>, vector<16x96xf32>
    tpu.vector_store %arg6[%c0_6, %c0_7], %7 {strides = array<i32>} : memref<16x96xf32, #tpu.memory_space<vmem>>, vector<16x96xf32>,
    %c0_i32_8 = arith.constant 0 : i32
    %9 = arith.cmpi eq, %arg2, %c0_i32_8 : i32
    %10 = arith.extui %9 : i1 to i32
    %c0_i32_9 = arith.constant 0 : i32
    %11 = arith.cmpi ne, %10, %c0_i32_9 : i32
    scf.if %11 {
      %c0_10 = arith.constant 0 : index
      %c0_11 = arith.constant 0 : index
      %12 = vector.load %arg6[%c0_10, %c0_11] : memref<16x96xf32, #tpu.memory_space<vmem>>, vector<16x96xf32>
      %c0_12 = arith.constant 0 : index
      %c0_13 = arith.constant 0 : index
      %13 = vector.load %arg5[%c0_12, %c0_13] : memref<16x96xf32, #tpu.memory_space<vmem>>, vector<16x96xf32>
      tpu.vector_store %arg5[%c0_12, %c0_13], %12 {strides = array<i32>} : memref<16x96xf32, #tpu.memory_space<vmem>>, vector<16x96xf32>,
    } else {
    }
    return
  }
  func.func @transform_0(%arg0: i32, %arg1: i32, %arg2: i32) -> (i32, i32) {
    %c0_i32 = arith.constant 0 : i32
    return %arg0, %arg2 : i32, i32
  }
  func.func @transform_1(%arg0: i32, %arg1: i32, %arg2: i32) -> (i32, i32) {
    %c0_i32 = arith.constant 0 : i32
    return %arg1, %arg2 : i32, i32
  }
  func.func @transform_2(%arg0: i32, %arg1: i32, %arg2: i32) -> (i32, i32) {
    %c0_i32 = arith.constant 0 : i32
    return %arg0, %arg1 : i32, i32
  }
}

</mosaic_0001>

<bundles_post_ra>
// kernel: tpu_custom_call.1
= control target key start
LH: loop header
LB: loop body
LE: loop exit
PB: predicated region body
PF: predicated region fallthrough
CT: control target
= control target key end

     0   :  { %vm35_vm0 = vcmask 261120   ;;  %vm16_vm1 = vcmask 785408   ;;  %v262_v2 = vmov 0.0   ;;  %s358_s0 = inlined_call_operand.vmem [shape: f32[16,32], index: 0, kind: input, shape index: {}]   ;;  %s359_s1 = inlined_call_operand.vmem [shape: f32[96,32], index: 1, kind: input, shape index: {}]   ;;  %s360_s2 = inlined_call_operand.hbm [shape: f32[16,96], index: 2, kind: output, shape index: {}]  }
   0x1   :  { %v34_v0 = vld [vmem:[%s359_s1 + $0x58] sm:$0xff]  ;;  %v33_v1 = vld [vmem:[%s359_s1 + $0x50] sm:$0xff]  ;;  %18 = vst.msk [vmem:[#allocation2 + $0x8] sm:$0xff] %vm16_vm1, %v262_v2  ;;  %17 = vst.msk [vmem:[#allocation2] sm:$0xff] %vm16_vm1, %v262_v2 }
   0x2   :  { %209 = vmatprep.subr.msk.mxu0 %vm35_vm0, %v34_v0  ;;  %v32_v3 = vld [vmem:[%s359_s1 + $0x48] sm:$0xff]  ;;  %v21_v4 = vld [vmem:[%s358_s0] sm:$0xff] }
   0x3   :  { %210 = vmatpush3.xpose.msk.msra.mxu0 %vm35_vm0, %v34_v0 }
   0x4   :  { %211 = vmatprep.subr.msk.mxu0 %vm35_vm0, %v33_v1 }
   0x5   :  { %7 = vsyncpa [#allocation4], 0  ;;  %233 = vmatprep.mubr.msk.f32.mxu0 %vm35_vm0, %v21_v4  ;;  %v31_v5 = vld [vmem:[%s359_s1 + $0x40] sm:$0xff]  ;;  %v30_v6 = vld [vmem:[%s359_s1 + $0x38] sm:$0xff] }
   0x6   :  { %v29_v7 = vld [vmem:[%s359_s1 + $0x30] sm:$0xff]  ;;  %v28_v8 = vld [vmem:[%s359_s1 + $0x28] sm:$0xff]  ;;  %v27_v9 = vld [vmem:[%s359_s1 + $0x20] sm:$0xff] }
   0x7   :  { %212 = vmatpush3.xpose.msk.msra.mxu0 %vm35_vm0, %v33_v1  ;;  %v26_v10 = vld [vmem:[%s359_s1 + $0x18] sm:$0xff]  ;;  %v25_v11 = vld [vmem:[%s359_s1 + $0x10] sm:$0xff]  ;;  %v24_v12 = vld [vmem:[%s359_s1 + $0x8] sm:$0xff] }
   0x8   :  { %213 = vmatprep.subr.msk.mxu0 %vm35_vm0, %v32_v3  ;;  %v23_v13 = vld [vmem:[%s359_s1] sm:$0xff]  ;;  %v22_v14 = vld [vmem:[%s358_s0 + $0x8] sm:$0xff]  ;;  %s263_s1 = smov [#allocation3]  }
   0x9   :  { %v20_v15 = vld [vmem:[#allocation2 + $0x8] sm:$0xff]  ;;  %v19_v17 = vld [vmem:[#allocation2] sm:$0xff]  ;;  %s170_s9 = sshll.u32 %s263_s1, 4  ;;  %s171_s9 = int_to_ptr.vmem [resolvable:$true] %s170_s9 }
   0xa   :  { %s240_s0 = scalar_lea.vmem %s171_s9, 256  ;;  %p245_p1 = scmp.lt.s32.totalorder %s171_s9, %s171_s9 }
   0xb   :  { %214 = vmatpush3.xpose.msk.msra.mxu0 %vm35_vm0, %v32_v3  ;;  %p241_p0 = scmp.ne.s32.totalorder %s171_s9, %s240_s0  ;;  %p246_p2 = scmp.lt.s32.totalorder %s240_s0, %s240_s0 }
   0xc   :  { %215 = vmatprep.subr.msk.mxu0 %vm35_vm0, %v31_v5 }
   0xd   :  { %p247_p3 = por %p246_p2, %p245_p1 }
   0xf   :  { %216 = vmatpush3.xpose.msk.msra.mxu0 %vm35_vm0, %v31_v5  ;;  %p248_p4 = pnand %p247_p3, %p241_p0 }
  0x10   :  { %217 = vmatprep.subr.msk.mxu0 %vm35_vm0, %v30_v6 }
  0x13   :  { %218 = vmatpush3.xpose.msk.msra.mxu0 %vm35_vm0, %v30_v6 }
  0x14   :  { %219 = vmatprep.subr.msk.mxu0 %vm35_vm0, %v29_v7 }
  0x17   :  { %220 = vmatpush3.xpose.msk.msra.mxu0 %vm35_vm0, %v29_v7 }
  0x18   :  { %221 = vmatprep.subr.msk.mxu0 %vm35_vm0, %v28_v8 }
  0x1b   :  { %222 = vmatpush3.xpose.msk.msra.mxu0 %vm35_vm0, %v28_v8 }
  0x1c   :  { %223 = vmatprep.subr.msk.mxu0 %vm35_vm0, %v27_v9 }
  0x1f   :  { %224 = vmatpush3.xpose.msk.msra.mxu0 %vm35_vm0, %v27_v9 }
  0x20   :  { %225 = vmatprep.subr.msk.mxu0 %vm35_vm0, %v26_v10 }
  0x23   :  { %226 = vmatpush3.xpose.msk.msra.mxu0 %vm35_vm0, %v26_v10 }
  0x24   :  { %227 = vmatprep.subr.msk.mxu0 %vm35_vm0, %v25_v11 }
  0x27   :  { %228 = vmatpush3.xpose.msk.msra.mxu0 %vm35_vm0, %v25_v11 }
  0x28   :  { %229 = vmatprep.subr.msk.mxu0 %vm35_vm0, %v24_v12 }
  0x2b   :  { %230 = vmatpush3.xpose.msk.msra.mxu0 %vm35_vm0, %v24_v12 }
  0x2c   :  { %231 = vmatprep.subr.msk.mxu0 %vm35_vm0, %v23_v13 }
  0x2f   :  { %232 = vmatpush3.xpose.msk.msra.mxu0 %vm35_vm0, %v23_v13 }
  0x32   :  { %234 = vmatmul.mubr.msk.f32.vlgmr.msra.gmra.mxu0 %vm35_vm0, %v22_v14 }
  0xf2   :  { %v235_v16 = vpop.f32.mrf.mxu0 }
  0xf3   :  { %v154_v18 = vadd.f32 %v235_v16, %v20_v15 }
  0xf4   :  { %v144_v19 = vpop.f32.mrf.mxu0 }
  0xf5   :  { %157 = vst.msk [vmem:[#allocation2 + $0x8] sm:$0xff] %vm16_vm1, %v154_v18  ;;  %v153_v20 = vadd.f32 %v144_v19, %v19_v17 }
  0xf7   :  { %156 = vst.msk [vmem:[#allocation2] sm:$0xff] %vm16_vm1, %v153_v20 }
  0xfc   :  { %v162_v21 = vld [vmem:[#allocation2 + $0x8] sm:$0xff] }
  0xfd   :  { %164 = vst.msk [vmem:[#allocation3 + $0x8] sm:$0xff] %vm16_vm1, %v162_v21 }
  0xfe   :  { %v161_v22 = vld [vmem:[#allocation2] sm:$0xff] }
  0xff   :  { %163 = vst.msk [vmem:[#allocation3] sm:$0xff] %vm16_vm1, %v161_v22 }
 0x100   :  { %251 = shalt.err (!%p248_p4)
}
 0x101   :  { %s264_s10 = smov 128   ;;  %s265_s11 = smov 8  }
 0x102   :  { %176 = dma.vmem_to_hbm [thread:$0]  %s171_s9, 256, %s360_s2, [#allocation4], %s264_s10, %s264_s10, %s265_s11  }
 0x103   :  { %260 = dma.done.wait [#allocation4], 256  }
 0x104   :  { %261 = vsyncadd [#allocation4], 4294967040 }
 0x105   :  { %180 = vsyncpa [#allocation4], 1 }

</bundles_post_ra>
